<compile_context>
chip_gen: v7x
topology: tpu7x:2x2x1
jax: 0.10.0
libtpu: 0.0.40
codegen_flags: <defaults>
</compile_context>

<pallas_src>
import functools

import jax
import jax.numpy as jnp
from jax import lax
from jax.experimental import pallas as pl
from jax.experimental.pallas import tpu as pltpu


def _round_up(x: int, m: int) -> int:
    return ((x + m - 1) // m) * m


def _sharpe_kernel(x_ref, wy_ref, out_ref, mean_ref, m2_ref, *,
                   t_true: int, n_true: int, tile_t: int, block_n: int,
                   last_rows: int, risk_free_rate: float,
                   last_tile_partial: bool, needs_col_mask: bool):
    n_idx = pl.program_id(0)          # parallel axis over asset blocks
    t_idx = pl.program_id(1)          # arbitrary (reduction) axis over time tiles
    num_t = pl.num_programs(1)
    is_last = t_idx == num_t - 1

    @pl.when(t_idx == 0)
    def _():
        mean_ref[...] = jnp.zeros_like(mean_ref)
        m2_ref[...] = jnp.zeros_like(m2_ref)

    # Running mean of the *raw* (unweighted) X columns; used as the shift for
    # the one-pass shifted sum-of-squares (well-conditioned since shift is
    # close to the tile mean after the first tile, and 0 before it).
    shift = mean_ref[...]                               # (1, block_n) f32
    d = x_ref[...].astype(jnp.float32) - shift          # (tile_t, block_n)

    def merge(dm, rows):
        # rows: f32 count of valid rows in this tile (>= 1).
        sum_d = jnp.sum(dm, axis=0, keepdims=True)       # (1, block_n)
        ssq_d = jnp.sum(dm * dm, axis=0, keepdims=True)  # (1, block_n)
        delta = sum_d / rows                             # tile_mean - running mean
        tile_m2 = ssq_d - delta * sum_d                  # exact shifted-M2 form
        n_a = (t_idx * tile_t).astype(jnp.float32)       # rows already merged
        n_ab = n_a + rows
        mean_ref[...] = shift + sum_d / n_ab             # Chan/Welford merge
        m2_ref[...] = m2_ref[...] + tile_m2 + delta * delta * (n_a * rows / n_ab)

    if last_tile_partial:
        @pl.when(t_idx != num_t - 1)
        def _():
            merge(d, jnp.float32(tile_t))                # full tiles: no masking

        @pl.when(is_last)
        def _():
            # Only the final tile is partial: discard OOB rows with a select
            # (not multiply) so undefined pad contents (NaN/Inf) can't leak.
            row = lax.broadcasted_iota(jnp.int32, (tile_t, block_n), 0)
            dm = jnp.where(row < last_rows, d, 0.0)
            merge(dm, jnp.float32(last_rows))
    else:
        merge(d, jnp.float32(tile_t))

    @pl.when(is_last)
    def _():
        # Deferred 1/N weighting: weighted_X stats from raw-X stats.
        inv_n = jnp.float32(1.0 / n_true)
        mean_x = mean_ref[...] * inv_n
        m2_x = m2_ref[...] * (inv_n * inv_n)
        # Fold in the weighted_y row (count 1, M2 0), then finalize.
        wy = wy_ref[...].astype(jnp.float32)             # (1, block_n)
        t_f = jnp.float32(t_true)
        inv_rows = jnp.float32(1.0 / (t_true + 1))
        delta_y = wy - mean_x
        mean_f = mean_x + delta_y * inv_rows
        m2_f = m2_x + delta_y * delta_y * (t_f * inv_rows)
        # unbiased std over (T+1) rows  ->  M2 / T
        stds = jnp.sqrt(m2_f * jnp.float32(1.0 / t_true))
        sharpe = (mean_f - jnp.float32(risk_free_rate)) / (stds + jnp.float32(1e-8))
        if needs_col_mask:
            col = lax.broadcasted_iota(jnp.int32, (1, block_n), 1)
            sharpe = jnp.where((col + n_idx * block_n) < n_true, sharpe, 0.0)
        out_ref[...] = sharpe                            # lane-dense write


def sharpe_ratio_loss(pred_weights, X, y, risk_free_rate: float = 0.0, *,
                      tile_t: int | None = None):
    """Pallas implementation of SharpeRatioLoss.forward."""
    T, N = X.shape
    in_itemsize = int(jnp.dtype(X.dtype).itemsize)
    # Sublane packing: f32 -> 8-row tiles, bf16 -> 16, int8/fp8 -> 32.
    row_align = max(8, 32 // max(1, in_itemsize))

    # Lane-dense asset blocking; prefer >= 2 column blocks whenever N > 128 so
    # both TensorCores get work on megacore parts (v7x).
    block_n = min(512, _round_up(N, 128))
    if N > 128 and pl.cdiv(N, block_n) < 2:
        block_n = _round_up(pl.cdiv(N, 2), 128)
    n_blocks = pl.cdiv(N, block_n)
    n_pad = n_blocks * block_n          # output kept lane-dense/padded (tiny)

    if tile_t is None:
        # ~1M elements per tile (4 MiB f32): double-buffering + f32 temporaries
        # fit comfortably inside v7x's 64 MiB VMEM, and tiles this size are
        # already near the HBM roofline on v5e/v6e.
        target_rows = max(row_align, ((1 << 20) // block_n) // row_align * row_align)
        tile_t = min(target_rows, _round_up(T, row_align))
    tile_t = max(row_align, _round_up(int(tile_t), row_align))
    num_t = pl.cdiv(T, tile_t)
    last_rows = T - (num_t - 1) * tile_t
    last_tile_partial = (last_rows != tile_t)
    needs_col_mask = (n_pad != N)

    # y * pred_weights folded into a single tiny f32 row.  X itself is passed
    # unpadded: no extra HBM read+write pass, partial tiles masked in-kernel.
    wy = (y.astype(jnp.float32) * pred_weights.astype(jnp.float32)).reshape(1, N)

    kernel = functools.partial(
        _sharpe_kernel,
        t_true=T, n_true=N, tile_t=tile_t, block_n=block_n, last_rows=last_rows,
        risk_free_rate=float(risk_free_rate),
        last_tile_partial=last_tile_partial, needs_col_mask=needs_col_mask,
    )

    # VMEM budget from the actual tile math: 2x double-buffered input tiles
    # plus ~3 f32 tile-sized temporaries plus headroom; clamp to [24, 48] MiB.
    tile_elems = tile_t * block_n
    vmem_needed = 2 * tile_elems * in_itemsize + 3 * tile_elems * 4 + (1 << 20)
    vmem_limit = int(min(48 << 20, max(24 << 20, vmem_needed)))

    sharpe = pl.pallas_call(
        kernel,
        out_shape=jax.ShapeDtypeStruct((1, n_pad), jnp.float32),
        grid_spec=pltpu.PrefetchScalarGridSpec(
            num_scalar_prefetch=0,
            grid=(n_blocks, num_t),
            in_specs=[
                pl.BlockSpec((tile_t, block_n), lambda n, t: (t, n)),   # X tiles
                pl.BlockSpec((1, block_n), lambda n, t: (0, n)),        # weighted_y
            ],
            out_specs=pl.BlockSpec((1, block_n), lambda n, t: (0, n)),  # per-asset sharpe
            scratch_shapes=[
                pltpu.VMEM((1, block_n), jnp.float32),   # running mean (raw X)
                pltpu.VMEM((1, block_n), jnp.float32),   # running M2  (raw X)
            ],
        ),
        compiler_params=pltpu.CompilerParams(
            dimension_semantics=("parallel", "arbitrary"),
            vmem_limit_bytes=vmem_limit,
        ),
        cost_estimate=pl.CostEstimate(
            flops=4 * T * N,
            transcendentals=n_pad,
            bytes_accessed=T * N * in_itemsize + N * 4 + n_pad * 4,
        ),
    )(X, wy)

    # Padded / out-of-range columns were written as 0; divide by the true N.
    return -(jnp.sum(sharpe) / N)


def _reference(pred_weights, X, y, risk_free_rate=0.0):
    # Pure-JAX reference mirroring the PyTorch module.
    T, N = X.shape
    weighted_X = X.astype(jnp.float32) * (1.0 / N)
    weighted_y = y.astype(jnp.float32) * pred_weights.astype(jnp.float32)
    R = jnp.concatenate([weighted_X, weighted_y[None, :]], axis=0)
    means = jnp.mean(R, axis=0)
    stds = jnp.std(R, axis=0, ddof=1)   # torch.std is unbiased by default
    sharpe = (means - risk_free_rate) / (stds + 1e-8)
    return -jnp.mean(sharpe)


if __name__ == "__main__":
    key = jax.random.PRNGKey(0)

    configs = [
        # (T, N, tile_t override, dtype)
        (8, 16, None, jnp.float32),       # single full tile, column mask only
        (21, 16, 8, jnp.float32),         # multi T-tile, partial last tile
        (21, 600, 8, jnp.float32),        # multi N-block + column mask
        (200, 300, 64, jnp.float32),      # 2 column blocks via block_n split
        (256, 128, None, jnp.float32),    # fully aligned: no masks at all
        (100, 256, 32, jnp.bfloat16),     # bf16 ingest + partial last tile
    ]

    for idx, (T, N, tt, dt) in enumerate(configs):
        k1, k2, k3 = jax.random.split(jax.random.fold_in(key, idx), 3)
        X = (jax.random.normal(k1, (T, N), dtype=jnp.float32) * 0.01).astype(dt)
        y = jax.random.normal(k2, (N,), dtype=jnp.float32) * 0.01
        pred_weights = jax.nn.softmax(jax.random.normal(k3, (N,), dtype=jnp.float32))

        loss = sharpe_ratio_loss(pred_weights, X, y, risk_free_rate=0.0, tile_t=tt)
        loss = jax.block_until_ready(loss)

        ref = _reference(pred_weights, X, y, risk_free_rate=0.0)
        if dt == jnp.bfloat16:
            ok = jnp.allclose(loss, ref, atol=1e-4, rtol=2e-3)
        else:
            ok = jnp.allclose(loss, ref, atol=2e-5, rtol=5e-4)
        assert ok, (idx, loss, ref)

    print("KERNEL_OK")
</pallas_src>

<mosaic_0001>
module attributes {stable_mosaic.version = 11 : i64} {
  func.func @_sharpe_kernel(%arg0: i32, %arg1: i32, %arg2: memref<8x128xf32, #tpu.memory_space<vmem>>, %arg3: memref<1x128xf32, #tpu.memory_space<vmem>>, %arg4: memref<1x128xf32, #tpu.memory_space<vmem>>, %arg5: memref<1x128xf32, #tpu.memory_space<vmem>>, %arg6: memref<1x128xf32, #tpu.memory_space<vmem>>) attributes {dimension_semantics = [#tpu.dimension_semantics<parallel>, #tpu.dimension_semantics<arbitrary>], iteration_bounds = array<i64: 1, 1>, scalar_prefetch = 0 : i64, scratch_operands = 2 : i64, tpu.core_type = #tpu.core_type<tc>, window_params = [{transform_indices = @transform_0, window_bounds = array<i64: 8, 128>}, {transform_indices = @transform_1, window_bounds = array<i64: 1, 128>}, {transform_indices = @transform_2, window_bounds = array<i64: 1, 128>}]} {
    %c0_i32 = arith.constant 0 : i32
    %0 = arith.cmpi eq, %arg1, %c0_i32 : i32
    %c0_i32_0 = arith.constant 0 : i32
    %1 = arith.cmpi eq, %arg1, %c0_i32_0 : i32
    %2 = arith.extui %1 : i1 to i32
    %c0_i32_1 = arith.constant 0 : i32
    %3 = arith.cmpi ne, %2, %c0_i32_1 : i32
    scf.if %3 {
      %cst_16 = arith.constant 0.000000e+00 : f32
      %35 = vector.broadcast %cst_16 : f32 to vector<1x128xf32>
      %c0_17 = arith.constant 0 : index
      %c0_18 = arith.constant 0 : index
      %36 = vector.load %arg5[%c0_17, %c0_18] : memref<1x128xf32, #tpu.memory_space<vmem>>, vector<1x128xf32>
      tpu.vector_store %arg5[%c0_17, %c0_18], %35 {strides = array<i32>} : memref<1x128xf32, #tpu.memory_space<vmem>>, vector<1x128xf32>,
      %cst_19 = arith.constant 0.000000e+00 : f32
      %37 = vector.broadcast %cst_19 : f32 to vector<1x128xf32>
      %c0_20 = arith.constant 0 : index
      %c0_21 = arith.constant 0 : index
      %38 = vector.load %arg6[%c0_20, %c0_21] : memref<1x128xf32, #tpu.memory_space<vmem>>, vector<1x128xf32>
      tpu.vector_store %arg6[%c0_20, %c0_21], %37 {strides = array<i32>} : memref<1x128xf32, #tpu.memory_space<vmem>>, vector<1x128xf32>,
    } else {
    }
    %c0 = arith.constant 0 : index
    %c0_2 = arith.constant 0 : index
    %4 = vector.load %arg5[%c0, %c0_2] : memref<1x128xf32, #tpu.memory_space<vmem>>, vector<1x128xf32>
    %c0_3 = arith.constant 0 : index
    %c0_4 = arith.constant 0 : index
    %5 = vector.load %arg2[%c0_3, %c0_4] : memref<8x128xf32, #tpu.memory_space<vmem>>, vector<8x128xf32>
    %6 = vector.broadcast %4 : vector<1x128xf32> to vector<8x128xf32>
    %7 = arith.subf %5, %6 : vector<8x128xf32>
    %cst = arith.constant dense<0.000000e+00> : vector<128xf32>
    %8 = vector.multi_reduction <add>, %7, %cst [0] : vector<8x128xf32> to vector<128xf32>
    %9 = vector.shape_cast %8 : vector<128xf32> to vector<1x128xf32>
    %10 = arith.mulf %7, %7 : vector<8x128xf32>
    %cst_5 = arith.constant dense<0.000000e+00> : vector<128xf32>
    %11 = vector.multi_reduction <add>, %10, %cst_5 [0] : vector<8x128xf32> to vector<128xf32>
    %12 = vector.shape_cast %11 : vector<128xf32> to vector<1x128xf32>
    %cst_6 = arith.constant 8.000000e+00 : f32
    %13 = vector.broadcast %cst_6 : f32 to vector<1x128xf32>
    %14 = arith.divf %9, %13 : vector<1x128xf32>
    %15 = arith.mulf %14, %9 : vector<1x128xf32>
    %16 = arith.subf %12, %15 : vector<1x128xf32>
    %c8_i32 = arith.constant 8 : i32
    %17 = arith.muli %arg1, %c8_i32 : i32
    %18 = arith.sitofp %17 : i32 to f32
    %cst_7 = arith.constant 8.000000e+00 : f32
    %19 = arith.addf %18, %cst_7 : f32
    %20 = vector.broadcast %19 : f32 to vector<1x128xf32>
    %21 = arith.divf %9, %20 : vector<1x128xf32>
    %22 = arith.addf %4, %21 : vector<1x128xf32>
    %c0_8 = arith.constant 0 : index
    %c0_9 = arith.constant 0 : index
    %23 = vector.load %arg5[%c0_8, %c0_9] : memref<1x128xf32, #tpu.memory_space<vmem>>, vector<1x128xf32>
    tpu.vector_store %arg5[%c0_8, %c0_9], %22 {strides = array<i32>} : memref<1x128xf32, #tpu.memory_space<vmem>>, vector<1x128xf32>,
    %c0_10 = arith.constant 0 : index
    %c0_11 = arith.constant 0 : index
    %24 = vector.load %arg6[%c0_10, %c0_11] : memref<1x128xf32, #tpu.memory_space<vmem>>, vector<1x128xf32>
    %25 = arith.addf %24, %16 : vector<1x128xf32>
    %26 = arith.mulf %14, %14 : vector<1x128xf32>
    %cst_12 = arith.constant 8.000000e+00 : f32
    %27 = arith.mulf %18, %cst_12 : f32
    %28 = arith.divf %27, %19 : f32
    %29 = vector.broadcast %28 : f32 to vector<1x128xf32>
    %30 = arith.mulf %26, %29 : vector<1x128xf32>
    %31 = arith.addf %25, %30 : vector<1x128xf32>
    %c0_13 = arith.constant 0 : index
    %c0_14 = arith.constant 0 : index
    %32 = vector.load %arg6[%c0_13, %c0_14] : memref<1x128xf32, #tpu.memory_space<vmem>>, vector<1x128xf32>
    tpu.vector_store %arg6[%c0_13, %c0_14], %31 {strides = array<i32>} : memref<1x128xf32, #tpu.memory_space<vmem>>, vector<1x128xf32>,
    %33 = arith.extui %0 : i1 to i32
    %c0_i32_15 = arith.constant 0 : i32
    %34 = arith.cmpi ne, %33, %c0_i32_15 : i32
    scf.if %34 {
      %c0_16 = arith.constant 0 : index
      %c0_17 = arith.constant 0 : index
      %35 = vector.load %arg5[%c0_16, %c0_17] : memref<1x128xf32, #tpu.memory_space<vmem>>, vector<1x128xf32>
      %cst_18 = arith.constant 6.250000e-02 : f32
      %36 = vector.broadcast %cst_18 : f32 to vector<1x128xf32>
      %37 = arith.mulf %35, %36 : vector<1x128xf32>
      %c0_19 = arith.constant 0 : index
      %c0_20 = arith.constant 0 : index
      %38 = vector.load %arg6[%c0_19, %c0_20] : memref<1x128xf32, #tpu.memory_space<vmem>>, vector<1x128xf32>
      %cst_21 = arith.constant 6.250000e-02 : f32
      %cst_22 = arith.constant 6.250000e-02 : f32
      %39 = arith.mulf %cst_21, %cst_22 : f32
      %40 = vector.broadcast %39 : f32 to vector<1x128xf32>
      %41 = arith.mulf %38, %40 : vector<1x128xf32>
      %c0_23 = arith.constant 0 : index
      %c0_24 = arith.constant 0 : index
      %42 = vector.load %arg3[%c0_23, %c0_24] : memref<1x128xf32, #tpu.memory_space<vmem>>, vector<1x128xf32>
      %43 = arith.subf %42, %37 : vector<1x128xf32>
      %cst_25 = arith.constant 0.111111112 : f32
      %44 = vector.broadcast %cst_25 : f32 to vector<1x128xf32>
      %45 = arith.mulf %43, %44 : vector<1x128xf32>
      %46 = arith.addf %37, %45 : vector<1x128xf32>
      %47 = arith.mulf %43, %43 : vector<1x128xf32>
      %cst_26 = arith.constant 8.000000e+00 : f32
      %cst_27 = arith.constant 0.111111112 : f32
      %48 = arith.mulf %cst_26, %cst_27 : f32
      %49 = vector.broadcast %48 : f32 to vector<1x128xf32>
      %50 = arith.mulf %47, %49 : vector<1x128xf32>
      %51 = arith.addf %41, %50 : vector<1x128xf32>
      %cst_28 = arith.constant 1.250000e-01 : f32
      %52 = vector.broadcast %cst_28 : f32 to vector<1x128xf32>
      %53 = arith.mulf %51, %52 : vector<1x128xf32>
      %54 = math.sqrt %53 : vector<1x128xf32>
      %cst_29 = arith.constant 0.000000e+00 : f32
      %55 = vector.broadcast %cst_29 : f32 to vector<1x128xf32>
      %56 = arith.subf %46, %55 : vector<1x128xf32>
      %cst_30 = arith.constant 9.99999993E-9 : f32
      %57 = vector.broadcast %cst_30 : f32 to vector<1x128xf32>
      %58 = arith.addf %54, %57 : vector<1x128xf32>
      %59 = arith.divf %56, %58 : vector<1x128xf32>
      %60 = tpu.iota {dimensions = array<i32: 1>} : vector<1x128xi32>
      %c128_i32 = arith.constant 128 : i32
      %61 = arith.muli %arg0, %c128_i32 : i32
      %62 = vector.broadcast %61 : i32 to vector<1x128xi32>
      %63 = arith.addi %60, %62 : vector<1x128xi32>
      %c16_i32 = arith.constant 16 : i32
      %64 = vector.broadcast %c16_i32 : i32 to vector<1x128xi32>
      %65 = arith.cmpi slt, %63, %64 : vector<1x128xi32>
      %cst_31 = arith.constant 0.000000e+00 : f32
      %66 = vector.broadcast %cst_31 : f32 to vector<1x128xf32>
      %67 = arith.select %65, %59, %66 : vector<1x128xi1>, vector<1x128xf32>
      %c0_32 = arith.constant 0 : index
      %c0_33 = arith.constant 0 : index
      %68 = vector.load %arg4[%c0_32, %c0_33] : memref<1x128xf32, #tpu.memory_space<vmem>>, vector<1x128xf32>
      tpu.vector_store %arg4[%c0_32, %c0_33], %67 {strides = array<i32>} : memref<1x128xf32, #tpu.memory_space<vmem>>, vector<1x128xf32>,
    } else {
    }
    return
  }
  func.func @transform_0(%arg0: i32, %arg1: i32) -> (i32, i32) {
    %c0_i32 = arith.constant 0 : i32
    return %arg1, %arg0 : i32, i32
  }
  func.func @transform_1(%arg0: i32, %arg1: i32) -> (i32, i32) {
    %c0_i32 = arith.constant 0 : i32
    %c0_i32_0 = arith.constant 0 : i32
    return %c0_i32, %arg0 : i32, i32
  }
  func.func @transform_2(%arg0: i32, %arg1: i32) -> (i32, i32) {
    %c0_i32 = arith.constant 0 : i32
    %c0_i32_0 = arith.constant 0 : i32
    return %c0_i32, %arg0 : i32, i32
  }
}

</mosaic_0001>

<bundles_post_ra>
// kernel: tpu_custom_call.1
= control target key start
LH: loop header
LB: loop body
LE: loop exit
PB: predicated region body
PF: predicated region fallthrough
CT: control target
= control target key end

     0   :  { %7 = vsyncpa [#allocation5], 0  ;;  %s224_s0 = inlined_call_operand.hbm [shape: f32[8,16], index: 0, kind: input, shape index: {}]   ;;  %s225_s1 = inlined_call_operand.vmem [shape: f32[1,16], index: 1, kind: input, shape index: {}]   ;;  %s226_s2 = inlined_call_operand.hbm [shape: f32[1,128], index: 2, kind: output, shape index: {}]  }
   0x1   :  { %8 = vsyncpa [#allocation6], 0  ;;  %s179_s9 = smov [#allocation4]   ;;  %s131_s13 = scalar_lea.hbm %s224_s0, 128 }
   0x2   :  { %s15_s10 = sshll.u32 %s179_s9, 4  ;;  %p132_p0 = scmp.ne.s32.totalorder %s224_s0, %s131_s13  ;;  %s16_s10 = int_to_ptr.vmem [resolvable:$true] %s15_s10 }
   0x3   :  { %p135_p1 = scmp.lt.u32.totalorder %s131_s13, %s224_s0 }
   0x5   :  { %p137_p2 = pnand %p135_p1, %p132_p0 }
   0x7   :  { %140 = shalt.err (!%p137_p2)
}
   0x8   :  { %s141_s18 = scalar_lea.vmem %s16_s10, 128  ;;  %p146_p4 = scmp.lt.s32.totalorder %s16_s10, %s16_s10 }
   0x9   :  { %p142_p3 = scmp.ne.s32.totalorder %s16_s10, %s141_s18  ;;  %p147_p5 = scmp.lt.s32.totalorder %s141_s18, %s141_s18 }
   0xb   :  { %p148_p6 = por %p147_p5, %p146_p4 }
   0xd   :  { %p149_p7 = pnand %p148_p6, %p142_p3 }
   0xf   :  { %152 = shalt.err (!%p149_p7)
}
  0x10   :  { %18 = dma.hbm_to_vmem [thread:$0]  %s224_s0, 128, %s16_s10, [#allocation5]  }
  0x11   :  { %175 = dma.done.wait [#allocation5], 128  }
  0x12   :  { %176 = vsyncadd [#allocation5], 4294967168  ;;  %v33_v0 = vlaneseq  ;;  %v180_v1 = vmov 0.0   ;;  %v31_v5 = vld [vmem:[#allocation4] sm:$0xff]  ;;  %v83_v31 = vld [vmem:[%s225_s1] sm:$0x1] }
  0x13   :  { %28 = vst [vmem:[#allocation2] sm:$0x1] %v180_v1  ;;  %29 = vst [vmem:[#allocation3] sm:$0x1] %v180_v1  ;;  %s181_s1 = smov [#allocation7]  }
  0x14   :  { %v34_v2 = vshrl.u32 %v33_v0, 7  ;;  %v102_v47 = vand.u32 127, %v33_v0  ;;  %s115_s22 = sshll.u32 %s181_s1, 4  ;;  %s116_s22 = int_to_ptr.vmem [resolvable:$true] %s115_s22 }
  0x15   :  { %s153_s23 = scalar_lea.vmem %s116_s22, 16  ;;  %s157_s24 = scalar_lea.vmem %s116_s22, 32 }
  0x16   :  { %v35_v3 = vsub.s32 0, %v34_v2  ;;  %vm106_vm2 = vcmp.lt.s32.totalorder %v102_v47, 16  ;;  %p154_p8 = scmp.ne.s32.totalorder %s116_s22, %s153_s23  ;;  %p158_p9 = scmp.lt.s32.totalorder %s116_s22, %s116_s22 }
  0x17   :  { %p159_p10 = scmp.lt.s32.totalorder %s157_s24, %s153_s23 }
  0x19   :  { %p160_p11 = por %p159_p10, %p158_p9 }
  0x1a   :  { %v30_v4 = vld [vmem:[#allocation2] sm:$0x1]  ;;  %v64_v25 = vld [vmem:[#allocation3] sm:$0x1] }
  0x1b   :  { %v36_v6 = vrot.slane %v30_v4, %v35_v3  ;;  %p161_p12 = pnand %p160_p11, %p154_p8 }
  0x1d   :  { %v38_v7 = vsub.f32 %v31_v5, %v36_v6 }
  0x1f   :  { %v39_v8 = vrot.slane %v38_v7, 4  ;;  %v45_v9 = vmul.f32 %v38_v7, %v38_v7 }
  0x21   :  { %v40_v10 = vadd.f32 %v39_v8, %v38_v7  ;;  %v46_v11 = vrot.slane %v45_v9, 4 }
  0x23   :  { %v41_v12 = vrot.slane %v40_v10, 2  ;;  %v47_v13 = vadd.f32 %v46_v11, %v45_v9 }
  0x25   :  { %v42_v14 = vadd.f32 %v41_v12, %v40_v10  ;;  %v48_v15 = vrot.slane %v47_v13, 2 }
  0x27   :  { %v43_v16 = vrot.slane %v42_v14, 1  ;;  %v49_v17 = vadd.f32 %v48_v15, %v47_v13 }
  0x29   :  { %v44_v18 = vadd.f32 %v43_v16, %v42_v14  ;;  %v50_v19 = vrot.slane %v49_v17, 1 }
  0x2b   :  { %v53_v20 = vmul.f32 0.125, %v44_v18  ;;  %v51_v22 = vadd.f32 %v50_v19, %v49_v17 }
  0x2d   :  { %v62_v21 = vadd.f32 %v53_v20, %v30_v4  ;;  %v54_v23 = vmul.f32 %v53_v20, %v44_v18  ;;  %v66_v24 = vmul.f32 %v53_v20, %v53_v20 }
  0x2f   :  { %63 = vst [vmem:[#allocation2] sm:$0x1] %v62_v21  ;;  %v55_v26 = vsub.f32 %v51_v22, %v54_v23  ;;  %v73_v28 = vmul.f32 0.0, %v66_v24 }
  0x31   :  { %v65_v27 = vadd.f32 %v64_v25, %v55_v26 }
  0x33   :  { %v74_v29 = vadd.f32 %v73_v28, %v65_v27 }
  0x35   :  { %75 = vst [vmem:[#allocation3] sm:$0x1] %v74_v29 }
  0x36   :  { %v79_v30 = vld [vmem:[#allocation2] sm:$0x1] }
  0x37   :  { %v80_v32 = vmul.f32 0.0625, %v79_v30 }
  0x39   :  { %v84_v33 = vsub.f32 %v83_v31, %v80_v32 }
  0x3b   :  { %v87_v34 = vmul.f32 %v84_v33, %v84_v33  ;;  %v85_v46 = vmul.f32 0.11111111, %v84_v33 }
  0x3c   :  { %v81_v35 = vld [vmem:[#allocation3] sm:$0x1] }
  0x3d   :  { %v82_v36 = vmul.f32 0.00390625, %v81_v35  ;;  %v88_v37 = vmul.f32 0.8888889, %v87_v34  ;;  %v86_v48 = vadd.f32 %v85_v46, %v80_v32 }
  0x3f   :  { %v89_v38 = vadd.f32 %v88_v37, %v82_v36 }
  0x41   :  { %v90_v39 = vmul.f32 0.125, %v89_v38 }
  0x43   :  { %127 = vrsqrt.f32 %v90_v39  ;;  %vm93_vm0 = vcmp.eq.f32.partialorder %v90_v39, inf  ;;  %v96_v42 = vand.u32 2147483648, %v90_v39  ;;  %vm95_vm1 = vcmp.eq.f32.partialorder %v90_v39, 0.0 }
  0x4d   :  { %v128_v40 = vpop.eup %127 }
  0x4e   :  { %v92_v41 = vmul.f32 %v128_v40, %v90_v39 }
  0x50   :  { %v94_v43 = vsel %vm93_vm0, %v90_v39, %v92_v41 }
  0x51   :  { %v97_v44 = vsel %vm95_vm1, %v96_v42, %v94_v43 }
  0x52   :  { %v98_v45 = vadd.f32 1e-08, %v97_v44 }
  0x54   :  { %129 = vrcp.f32 %v98_v45 }
  0x5e   :  { %v130_v49 = vpop.eup %129 }
  0x5f   :  { %v100_v50 = vmul.f32 %v130_v49, %v86_v48 }
  0x61   :  { %v107_v51 = vsel %vm106_vm2, %v100_v50, 0.0 }
  0x62   :  { %108 = vst [vmem:[#allocation7] sm:$0x1] %v107_v51 }
  0x63   :  { %164 = shalt.err (!%p161_p12)
}
  0x64   :  { %s165_s27 = scalar_lea.hbm %s226_s2, 16 }
  0x65   :  { %p166_p13 = scmp.ne.s32.totalorder %s226_s2, %s165_s27  ;;  %p169_p0 = scmp.lt.u32.totalorder %s165_s27, %s226_s2 }
  0x67   :  { %p171_p1 = pnand %p169_p0, %p166_p13 }
  0x69   :  { %174 = shalt.err (!%p171_p1)
}
  0x6a   :  { %118 = dma.vmem_to_hbm [thread:$0]  %s116_s22, 16, %s226_s2, [#allocation6]  }
  0x6b   :  { %177 = dma.done.wait [#allocation6], 16  }
  0x6c   :  { %178 = vsyncadd [#allocation6], 4294967280 }
  0x6d   :  { %122 = vsyncpa [#allocation5], 1 }
  0x6e   :  { %123 = vsyncpa [#allocation6], 1 }

</bundles_post_ra>
